<compile_context>
chip_gen: v7x
topology: tpu7x:2x2x1
jax: 0.10.0
libtpu: 0.0.40
codegen_flags: <defaults>
</compile_context>

<pallas_src>
import jax
import jax.numpy as jnp
from jax.experimental import pallas as pl
from jax.experimental.pallas import tpu as pltpu

H = 32                                    # hidden_channels
NUM_NODE_INFO = {"user": 12, "group": 6, "item": 20}
NODE_TYPES = ["user", "group", "item"]
EDGE_TYPES = [("user", "to", "group"),
              ("item", "to", "group"),
              ("group", "to", "user"),
              ("user", "to", "item")]
E_PER_TYPE = 16

UG = ("user", "to", "group")
IG = ("item", "to", "group")
GU = ("group", "to", "user")
UI = ("user", "to", "item")

NU, NG, NI = NUM_NODE_INFO["user"], NUM_NODE_INFO["group"], NUM_NODE_INFO["item"]
NA = NU + NI          # 32 stacked user+item rows
NGP = 8               # group rows padded to one sublane tile
LANES = 128

# --- parameter-slab layout (rows of the single (SLAB_ROWS, 128) f32 input) ---
R_T1, R_W2G, R_W2S, R_WP, R_VEC = 0, 32, 64, 96, 128
N_VEC_ROWS = 16
SLAB_ROWS = R_VEC + N_VEC_ROWS                      # 144
# rows inside the bias / attention-vector block
(V_C1UG_AS, V_C1IG_AS, V_C1UI_AS, V_C1UI_AD, V_B1G,
 V_C2UG_AS, V_C2UG_AD, V_C2IG_AS, V_C2IG_AD, V_B2G, V_PREDB) = range(11)

# --- mask-slab layout (columns of the single (32, 128) f32 per-call input) ---
C_UG, C_IG, C_UI = 0, 32, 64


# ------------------------------ fused kernel --------------------------------

def _randgr_fused_kernel(idx_ref, mask_ref, p_ref, out_ref):
    f32 = jnp.float32

    vec = p_ref[R_VEC:R_VEC + N_VEC_ROWS, :]          # (16,128) bias/att table

    def vrow(i):                                       # (1,H) row of the table
        return vec[i:i + 1, 0:H]

    def gat(hs, att_s, alpha_d, mask):
        """Bias-free dense GATConv aggregation (heads=1, slope 0.2).

        hs: (Ns,H) lin_src(x_src); alpha_d: (Nd,1) or None (zero dst feats);
        mask: (Nd,Ns) dense adjacency. Fully-masked dst rows return exactly 0.
        """
        a_s = jax.lax.dot_general(att_s, hs, (((1,), (1,)), ((), ())),
                                  preferred_element_type=f32)          # (1,Ns)
        e = a_s if alpha_d is None else alpha_d + a_s                  # (Nd,Ns)
        e = jnp.where(e > 0, e, 0.2 * e)                               # LeakyReLU(0.2)
        e = e + (mask - 1.0) * 1e30                                    # additive -inf mask
        m = jnp.max(e, axis=1, keepdims=True)
        p = jnp.exp(e - m) * mask            # *mask zeroes rows with no incoming edge
        den = jnp.sum(p, axis=1, keepdims=True)
        inv = pl.reciprocal(jnp.where(den > 0.0, den, 1.0), approx=True)
        return jnp.dot(p * inv, hs, preferred_element_type=f32)        # (Nd,H)

    msk = mask_ref[...]                                # (32,128)
    m_ug = msk[0:NGP, C_UG:C_UG + NU]                  # (8,12)  rows 6,7 all-zero pad
    m_ig = msk[0:NGP, C_IG:C_IG + NI]                  # (8,20)
    m_ui = msk[:, C_UI:C_UI + NU]                      # (32,12) rows 0..11 all-zero

    # ---- embedding gather + both layer-1 projections: ONE MXU push ---------
    # T1 rows = [emb_user ; emb_item] pre-multiplied by the packed layer-1
    # weight slab, with the per-node-type layer-1 biases folded into cols 0:H.
    iota = jax.lax.broadcasted_iota(jnp.int32, (NA, NA), 1)
    onehot = (iota == idx_ref[...]).astype(f32)                        # (32,32)
    h1raw = jnp.dot(onehot, p_ref[R_T1:R_T1 + NA, :],
                    preferred_element_type=f32)                        # (32,128)
    lin1 = h1raw[:, 0:H]           # lin1_{user|item}(emb) + folded biases
    gsrc = h1raw[:, H:2 * H]       # user rows: c1_ug src feats; item rows: c1_ig src
    uift = h1raw[:, 2 * H:3 * H]   # user rows: c1_ui src feats; item rows: c1_ui dst

    # ---- layer 1, dst = group (zero 'group' embedding => alpha_dst == 0) ---
    g_ug = gat(gsrc[0:NU, :], vrow(V_C1UG_AS), None, m_ug)             # (8,H)
    g_ig = gat(gsrc[NU:NA, :], vrow(V_C1IG_AS), None, m_ig)            # (8,H)
    h1_g = jnp.maximum(vrow(V_B1G) + g_ug + g_ig, 0.0)                 # (8,H)

    # ---- layer 1, dst = user / item, in stacked (32,H) form -----------------
    # user->item attention evaluated over all 32 rows; the 12 user rows are
    # fully masked so they contribute exactly 0 (and their c1_ui bias is not in
    # their folded bias). conv1(group->user) collapsed to its bias (folded).
    a_d_ui = jnp.sum(uift * vrow(V_C1UI_AD), axis=1, keepdims=True)    # (32,1)
    ui_agg = gat(uift[0:NU, :], vrow(V_C1UI_AS), a_d_ui, m_ui)         # (32,H)
    h1_all = jnp.maximum(lin1 + ui_agg, 0.0)  # rows 0..11 = h1_user, 12..31 = h1_item

    # ---- layer 2: only the 'group' output feeds the predictor ---------------
    hg2 = jnp.dot(h1_g, p_ref[R_W2G:R_W2G + H, :],
                  preferred_element_type=f32)                          # (8,128)
    g2_lin, hd2_ug, hd2_ig = hg2[:, 0:H], hg2[:, H:2 * H], hg2[:, 2 * H:3 * H]

    # both layer-2 source projections in one push; only the matching quadrants
    # of the result are read.
    hs2 = jnp.dot(h1_all, p_ref[R_W2S:R_W2S + H, :],
                  preferred_element_type=f32)                          # (32,128)
    hs2_ug = hs2[0:NU, 0:H]          # h1_user @ c2_ug.w_src
    hs2_ig = hs2[NU:NA, H:2 * H]     # h1_item @ c2_ig.w_src

    a_d_ug = jnp.sum(hd2_ug * vrow(V_C2UG_AD), axis=1, keepdims=True)  # (8,1)
    a_d_ig = jnp.sum(hd2_ig * vrow(V_C2IG_AD), axis=1, keepdims=True)
    c2_ug = gat(hs2_ug, vrow(V_C2UG_AS), a_d_ug, m_ug)                 # (8,H)
    c2_ig = gat(hs2_ig, vrow(V_C2IG_AS), a_d_ig, m_ig)                 # (8,H)
    h2_g = g2_lin + vrow(V_B2G) + c2_ug + c2_ig                        # (8,H)

    # ---- predictor: lane-dense (8,128) store ---------------------------------
    out_ref[...] = (jnp.dot(h2_g, p_ref[R_WP:R_WP + H, :],
                            preferred_element_type=f32)
                    + vec[V_PREDB:V_PREDB + 1, :])


# ------------------------------ wrapper --------------------------------------

def _full_spec(shape):
    return pl.BlockSpec(shape, lambda i: (0,) * len(shape))


@jax.jit
def randgr_forward(param_slab, idx, mask_slab):
    out = pl.pallas_call(
        _randgr_fused_kernel,
        out_shape=jax.ShapeDtypeStruct((NGP, LANES), jnp.float32),
        grid=(1,),
        in_specs=[_full_spec(idx.shape),
                  _full_spec(mask_slab.shape),
                  _full_spec(param_slab.shape)],
        out_specs=_full_spec((NGP, LANES)),
        # NOTE(v7x): single-step grid runs on one TensorCore; at N<=20, H=32
        # there is nothing worth sharding. For batched serving, add a leading
        # "parallel" batch grid axis so the second TC is used.
        compiler_params=pltpu.CompilerParams(dimension_semantics=("arbitrary",)),
    )(idx, mask_slab, param_slab)
    return {"group": out[:NG, :NI]}


# --------------------------- params / packing --------------------------------

def init_params(key):
    params = {"emb": {}, "conv1": {}, "lin1": {}, "conv2": {}, "lin2": {}}

    def nxt():
        nonlocal key
        key, sub = jax.random.split(key)
        return sub

    for t in NODE_TYPES:
        params["emb"][t] = 0.1 * jax.random.normal(nxt(), (NUM_NODE_INFO[t], H), jnp.float32)

    for layer in ("conv1", "conv2"):
        for et in EDGE_TYPES:
            params[layer][et] = {
                "w_src":  0.1 * jax.random.normal(nxt(), (H, H), jnp.float32),
                "w_dst":  0.1 * jax.random.normal(nxt(), (H, H), jnp.float32),
                "att_src": 0.1 * jax.random.normal(nxt(), (H,), jnp.float32),
                "att_dst": 0.1 * jax.random.normal(nxt(), (H,), jnp.float32),
                "bias":   0.1 * jax.random.normal(nxt(), (H,), jnp.float32),
            }
    for layer in ("lin1", "lin2"):
        for t in NODE_TYPES:
            params[layer][t] = {
                "w": 0.1 * jax.random.normal(nxt(), (H, H), jnp.float32),
                "b": 0.1 * jax.random.normal(nxt(), (H,), jnp.float32),
            }
    params["pred_w"] = 0.1 * jax.random.normal(nxt(), (H, NI), jnp.float32)
    params["pred_b"] = 0.1 * jax.random.normal(nxt(), (NI,), jnp.float32)
    return params


def pack_params(params):
    """One-time repack of every eval-mode parameter into a single (144,128) slab.

    Rows 0:32   T1  = [emb_u ; emb_i] @ packed-layer-1-weights, with the
                      per-node-type layer-1 bias folded into columns 0:H
                      (user rows: lin1_u.b + conv1(g->u).bias; item rows:
                      lin1_i.b + conv1(u->i).bias).
    Rows 32:64  W2g = [lin2_g.w | c2_ug.w_dst | c2_ig.w_dst | 0]
    Rows 64:96  W2s = [c2_ug.w_src | c2_ig.w_src | 0 | 0]
    Rows 96:128 Wp  = predictor weight padded to 128 lanes
    Rows 128:   bias / attention-vector table (one row each, cols 0:H).
    """
    f32 = jnp.float32
    c1, c2 = params["conv1"], params["conv2"]
    l1, l2 = params["lin1"], params["lin2"]
    zH = jnp.zeros((H, H), f32)

    w1u = jnp.concatenate([l1["user"]["w"], c1[UG]["w_src"], c1[UI]["w_src"], zH],
                          axis=1).astype(f32)          # (H,128), input: emb_user
    w1i = jnp.concatenate([l1["item"]["w"], c1[IG]["w_src"], c1[UI]["w_dst"], zH],
                          axis=1).astype(f32)          # (H,128), input: emb_item

    # fold the embedding tables through layer-1 (exact by associativity)
    t_u = params["emb"]["user"].astype(f32) @ w1u      # (12,128)
    t_i = params["emb"]["item"].astype(f32) @ w1i      # (20,128)
    b1u = l1["user"]["b"] + c1[GU]["bias"]             # conv1(g->u) == bias (zero src)
    b1i = l1["item"]["b"] + c1[UI]["bias"]
    t_u = t_u.at[:, 0:H].add(b1u[None, :])
    t_i = t_i.at[:, 0:H].add(b1i[None, :])
    T1 = jnp.concatenate([t_u, t_i], axis=0)           # (32,128)

    W2g = jnp.concatenate([l2["group"]["w"], c2[UG]["w_dst"], c2[IG]["w_dst"], zH],
                          axis=1).astype(f32)          # (32,128)
    W2s = jnp.concatenate([c2[UG]["w_src"], c2[IG]["w_src"], zH, zH],
                          axis=1).astype(f32)          # (32,128)
    Wp = jnp.concatenate([params["pred_w"].astype(f32),
                          jnp.zeros((H, LANES - NI), f32)], axis=1)    # (32,128)

    def row(v, n=H):
        r = jnp.zeros((1, LANES), f32)
        return r.at[0, 0:n].set(v.astype(f32))

    b1g = l1["group"]["b"] + c1[UG]["bias"] + c1[IG]["bias"]   # lin1_group(0)=bias
    b2g = l2["group"]["b"] + c2[UG]["bias"] + c2[IG]["bias"]

    vec_rows = jnp.concatenate([
        row(c1[UG]["att_src"]), row(c1[IG]["att_src"]),
        row(c1[UI]["att_src"]), row(c1[UI]["att_dst"]),
        row(b1g),
        row(c2[UG]["att_src"]), row(c2[UG]["att_dst"]),
        row(c2[IG]["att_src"]), row(c2[IG]["att_dst"]),
        row(b2g),
        row(params["pred_b"], n=NI),
    ], axis=0)                                                 # (11,128)
    vec_rows = jnp.concatenate(
        [vec_rows, jnp.zeros((N_VEC_ROWS - vec_rows.shape[0], LANES), f32)], axis=0)

    slab = jnp.concatenate([T1, W2g, W2s, Wp, vec_rows], axis=0).astype(f32)
    assert slab.shape == (SLAB_ROWS, LANES)
    return slab


def pack_inputs(x_idx, masks):
    """Per-graph packing: 2 kernel inputs instead of 5.

    idx  (32,1) int32 : rows 0..11 user indices, rows 12..31 item indices + 12
                        (row offsets into the stacked T1 table).
    mask (32,128) f32 : cols 0:12  = user->group adjacency (rows 0..5),
                        cols 32:52 = item->group adjacency (rows 0..5),
                        cols 64:76 = user->item adjacency (rows 12..31);
                        all padding rows/cols are zero (= "no edge").
    """
    idx = jnp.concatenate([x_idx["user"].astype(jnp.int32),
                           NU + x_idx["item"].astype(jnp.int32)]).reshape(-1, 1)
    msk = jnp.zeros((NA, LANES), jnp.float32)
    msk = msk.at[0:NG, C_UG:C_UG + NU].set(masks[UG])
    msk = msk.at[0:NG, C_IG:C_IG + NI].set(masks[IG])
    msk = msk.at[NU:NA, C_UI:C_UI + NU].set(masks[UI])
    return idx, msk


# --------------------------------- main ---------------------------------------

if __name__ == "__main__":
    root = jax.random.PRNGKey(0)
    k_x, k_e, k_p = jax.random.split(root, 3)

    # node index inputs x[t] (what the Embedding layers consume)
    x_idx = {
        t: jax.random.randint(jax.random.fold_in(k_x, i),
                              (NUM_NODE_INFO[t],), 0, NUM_NODE_INFO[t])
        for i, t in enumerate(NODE_TYPES)
    }

    # edge_index per edge type -> dense adjacency masks (N_dst, N_src)
    masks = {}
    for i, (s, r, d) in enumerate(EDGE_TYPES):
        ns, nd = NUM_NODE_INFO[s], NUM_NODE_INFO[d]
        flat = jax.random.choice(jax.random.fold_in(k_e, i), ns * nd,
                                 (E_PER_TYPE,), replace=False)
        src = flat // nd
        dst = flat % nd
        masks[(s, r, d)] = jnp.zeros((nd, ns), jnp.float32).at[dst, src].set(1.0)

    params = init_params(k_p)
    param_slab = pack_params(params)
    idx, mask_slab = pack_inputs(x_idx, masks)

    out = randgr_forward(param_slab, idx, mask_slab)
    jax.block_until_ready(out["group"])
    assert out["group"].shape == (NG, NI)
    assert bool(jnp.all(jnp.isfinite(out["group"])))
    print("KERNEL_OK")
</pallas_src>

<mosaic_0001>
module attributes {stable_mosaic.version = 11 : i64} {
  func.func @_randgr_fused_kernel(%arg0: i32, %arg1: memref<32x1xi32, #tpu.memory_space<vmem>>, %arg2: memref<32x128xf32, #tpu.memory_space<vmem>>, %arg3: memref<144x128xf32, #tpu.memory_space<vmem>>, %arg4: memref<8x128xf32, #tpu.memory_space<vmem>>) attributes {dimension_semantics = [#tpu.dimension_semantics<arbitrary>], iteration_bounds = array<i64: 1>, scalar_prefetch = 0 : i64, scratch_operands = 0 : i64, tpu.core_type = #tpu.core_type<tc>, window_params = [{pipeline_mode = #tpu.pipeline_mode<synchronous>, transform_indices = @transform_0, window_bounds = array<i64: 32, 1>}, {pipeline_mode = #tpu.pipeline_mode<synchronous>, transform_indices = @transform_1, window_bounds = array<i64: 32, 128>}, {pipeline_mode = #tpu.pipeline_mode<synchronous>, transform_indices = @transform_2, window_bounds = array<i64: 144, 128>}, {pipeline_mode = #tpu.pipeline_mode<synchronous>, transform_indices = @transform_3, window_bounds = array<i64: 8, 128>}]} {
    %c128 = arith.constant 128 : index
    %c0 = arith.constant 0 : index
    %0 = vector.load %arg3[%c128, %c0] : memref<144x128xf32, #tpu.memory_space<vmem>>, vector<16x128xf32>
    %c0_0 = arith.constant 0 : index
    %c0_1 = arith.constant 0 : index
    %1 = vector.load %arg2[%c0_0, %c0_1] : memref<32x128xf32, #tpu.memory_space<vmem>>, vector<32x128xf32>
    %2 = vector.extract_strided_slice %1 {offsets = [0, 0], sizes = [8, 12], strides = [1, 1]} : vector<32x128xf32> to vector<8x12xf32>
    %3 = vector.extract_strided_slice %1 {offsets = [0, 32], sizes = [8, 20], strides = [1, 1]} : vector<32x128xf32> to vector<8x20xf32>
    %4 = vector.extract_strided_slice %1 {offsets = [0, 64], sizes = [32, 12], strides = [1, 1]} : vector<32x128xf32> to vector<32x12xf32>
    %5 = tpu.iota {dimensions = array<i32: 1>} : vector<32x32xi32>
    %c0_2 = arith.constant 0 : index
    %c0_3 = arith.constant 0 : index
    %6 = vector.load %arg1[%c0_2, %c0_3] : memref<32x1xi32, #tpu.memory_space<vmem>>, vector<32x1xi32>
    %7 = vector.broadcast %6 : vector<32x1xi32> to vector<32x32xi32>
    %8 = arith.cmpi eq, %5, %7 : vector<32x32xi32>
    %9 = arith.extui %8 : vector<32x32xi1> to vector<32x32xi32>
    %10 = arith.sitofp %9 : vector<32x32xi32> to vector<32x32xf32>
    %c0_4 = arith.constant 0 : index
    %c0_5 = arith.constant 0 : index
    %11 = vector.load %arg3[%c0_4, %c0_5] : memref<144x128xf32, #tpu.memory_space<vmem>>, vector<32x128xf32>
    %cst = arith.constant dense<0.000000e+00> : vector<32x128xf32>
    %12 = tpu.matmul %10, %11, %cst {dimension_numbers = #tpu.dot_dimension_numbers<[1], [0], [0], [1], [0, 0, 1, 1], [], []>} : vector<32x32xf32>, vector<32x128xf32>, vector<32x128xf32> -> vector<32x128xf32>
    %13 = vector.extract_strided_slice %12 {offsets = [0, 0], sizes = [32, 32], strides = [1, 1]} : vector<32x128xf32> to vector<32x32xf32>
    %14 = vector.extract_strided_slice %12 {offsets = [0, 32], sizes = [32, 32], strides = [1, 1]} : vector<32x128xf32> to vector<32x32xf32>
    %15 = vector.extract_strided_slice %12 {offsets = [0, 64], sizes = [32, 32], strides = [1, 1]} : vector<32x128xf32> to vector<32x32xf32>
    %16 = vector.extract_strided_slice %14 {offsets = [0, 0], sizes = [12, 32], strides = [1, 1]} : vector<32x32xf32> to vector<12x32xf32>
    %17 = vector.extract_strided_slice %0 {offsets = [0, 0], sizes = [1, 32], strides = [1, 1]} : vector<16x128xf32> to vector<1x32xf32>
    %cst_6 = arith.constant dense<0.000000e+00> : vector<1x12xf32>
    %18 = tpu.matmul %17, %16, %cst_6 {dimension_numbers = #tpu.dot_dimension_numbers<[1], [1], [0], [0], [0, 0, 1, 0], [], []>} : vector<1x32xf32>, vector<12x32xf32>, vector<1x12xf32> -> vector<1x12xf32>
    %cst_7 = arith.constant 0.000000e+00 : f32
    %19 = vector.broadcast %cst_7 : f32 to vector<1x12xf32>
    %20 = arith.cmpf ogt, %18, %19 : vector<1x12xf32>
    %cst_8 = arith.constant 2.000000e-01 : f32
    %21 = vector.broadcast %cst_8 : f32 to vector<1x12xf32>
    %22 = arith.mulf %21, %18 : vector<1x12xf32>
    %23 = arith.select %20, %18, %22 : vector<1x12xi1>, vector<1x12xf32>
    %cst_9 = arith.constant 1.000000e+00 : f32
    %24 = vector.broadcast %cst_9 : f32 to vector<8x12xf32>
    %25 = arith.subf %2, %24 : vector<8x12xf32>
    %cst_10 = arith.constant 1.000000e+30 : f32
    %26 = vector.broadcast %cst_10 : f32 to vector<8x12xf32>
    %27 = arith.mulf %25, %26 : vector<8x12xf32>
    %28 = vector.broadcast %23 : vector<1x12xf32> to vector<8x12xf32>
    %29 = arith.addf %28, %27 : vector<8x12xf32>
    %cst_11 = arith.constant dense<0xFF800000> : vector<8xf32>
    %30 = vector.multi_reduction <maximumf>, %29, %cst_11 [1] : vector<8x12xf32> to vector<8xf32>
    %31 = vector.shape_cast %30 : vector<8xf32> to vector<8x1xf32>
    %32 = vector.broadcast %31 : vector<8x1xf32> to vector<8x12xf32>
    %33 = arith.subf %29, %32 : vector<8x12xf32>
    %34 = math.exp %33 : vector<8x12xf32>
    %35 = arith.mulf %34, %2 : vector<8x12xf32>
    %cst_12 = arith.constant dense<0.000000e+00> : vector<8xf32>
    %36 = vector.multi_reduction <add>, %35, %cst_12 [1] : vector<8x12xf32> to vector<8xf32>
    %37 = vector.shape_cast %36 : vector<8xf32> to vector<8x1xf32>
    %cst_13 = arith.constant 0.000000e+00 : f32
    %38 = vector.broadcast %cst_13 : f32 to vector<8x1xf32>
    %39 = arith.cmpf ogt, %37, %38 : vector<8x1xf32>
    %cst_14 = arith.constant 1.000000e+00 : f32
    %40 = vector.broadcast %cst_14 : f32 to vector<8x1xf32>
    %41 = arith.select %39, %37, %40 : vector<8x1xi1>, vector<8x1xf32>
    %42 = tpu.reciprocal %41 {approx = true} : vector<8x1xf32> -> vector<8x1xf32>
    %43 = vector.broadcast %42 : vector<8x1xf32> to vector<8x12xf32>
    %44 = arith.mulf %35, %43 : vector<8x12xf32>
    %cst_15 = arith.constant dense<0.000000e+00> : vector<8x32xf32>
    %45 = tpu.matmul %44, %16, %cst_15 {dimension_numbers = #tpu.dot_dimension_numbers<[1], [0], [0], [1], [0, 0, 1, 1], [], []>} : vector<8x12xf32>, vector<12x32xf32>, vector<8x32xf32> -> vector<8x32xf32>
    %46 = vector.extract_strided_slice %14 {offsets = [12, 0], sizes = [20, 32], strides = [1, 1]} : vector<32x32xf32> to vector<20x32xf32>
    %47 = vector.extract_strided_slice %0 {offsets = [1, 0], sizes = [1, 32], strides = [1, 1]} : vector<16x128xf32> to vector<1x32xf32>
    %cst_16 = arith.constant dense<0.000000e+00> : vector<1x20xf32>
    %48 = tpu.matmul %47, %46, %cst_16 {dimension_numbers = #tpu.dot_dimension_numbers<[1], [1], [0], [0], [0, 0, 1, 0], [], []>} : vector<1x32xf32>, vector<20x32xf32>, vector<1x20xf32> -> vector<1x20xf32>
    %cst_17 = arith.constant 0.000000e+00 : f32
    %49 = vector.broadcast %cst_17 : f32 to vector<1x20xf32>
    %50 = arith.cmpf ogt, %48, %49 : vector<1x20xf32>
    %cst_18 = arith.constant 2.000000e-01 : f32
    %51 = vector.broadcast %cst_18 : f32 to vector<1x20xf32>
    %52 = arith.mulf %51, %48 : vector<1x20xf32>
    %53 = arith.select %50, %48, %52 : vector<1x20xi1>, vector<1x20xf32>
    %cst_19 = arith.constant 1.000000e+00 : f32
    %54 = vector.broadcast %cst_19 : f32 to vector<8x20xf32>
    %55 = arith.subf %3, %54 : vector<8x20xf32>
    %cst_20 = arith.constant 1.000000e+30 : f32
    %56 = vector.broadcast %cst_20 : f32 to vector<8x20xf32>
    %57 = arith.mulf %55, %56 : vector<8x20xf32>
    %58 = vector.broadcast %53 : vector<1x20xf32> to vector<8x20xf32>
    %59 = arith.addf %58, %57 : vector<8x20xf32>
    %cst_21 = arith.constant dense<0xFF800000> : vector<8xf32>
    %60 = vector.multi_reduction <maximumf>, %59, %cst_21 [1] : vector<8x20xf32> to vector<8xf32>
    %61 = vector.shape_cast %60 : vector<8xf32> to vector<8x1xf32>
    %62 = vector.broadcast %61 : vector<8x1xf32> to vector<8x20xf32>
    %63 = arith.subf %59, %62 : vector<8x20xf32>
    %64 = math.exp %63 : vector<8x20xf32>
    %65 = arith.mulf %64, %3 : vector<8x20xf32>
    %cst_22 = arith.constant dense<0.000000e+00> : vector<8xf32>
    %66 = vector.multi_reduction <add>, %65, %cst_22 [1] : vector<8x20xf32> to vector<8xf32>
    %67 = vector.shape_cast %66 : vector<8xf32> to vector<8x1xf32>
    %cst_23 = arith.constant 0.000000e+00 : f32
    %68 = vector.broadcast %cst_23 : f32 to vector<8x1xf32>
    %69 = arith.cmpf ogt, %67, %68 : vector<8x1xf32>
    %cst_24 = arith.constant 1.000000e+00 : f32
    %70 = vector.broadcast %cst_24 : f32 to vector<8x1xf32>
    %71 = arith.select %69, %67, %70 : vector<8x1xi1>, vector<8x1xf32>
    %72 = tpu.reciprocal %71 {approx = true} : vector<8x1xf32> -> vector<8x1xf32>
    %73 = vector.broadcast %72 : vector<8x1xf32> to vector<8x20xf32>
    %74 = arith.mulf %65, %73 : vector<8x20xf32>
    %cst_25 = arith.constant dense<0.000000e+00> : vector<8x32xf32>
    %75 = tpu.matmul %74, %46, %cst_25 {dimension_numbers = #tpu.dot_dimension_numbers<[1], [0], [0], [1], [0, 0, 1, 1], [], []>} : vector<8x20xf32>, vector<20x32xf32>, vector<8x32xf32> -> vector<8x32xf32>
    %76 = vector.extract_strided_slice %0 {offsets = [4, 0], sizes = [1, 32], strides = [1, 1]} : vector<16x128xf32> to vector<1x32xf32>
    %77 = vector.broadcast %76 : vector<1x32xf32> to vector<8x32xf32>
    %78 = arith.addf %77, %45 : vector<8x32xf32>
    %79 = arith.addf %78, %75 : vector<8x32xf32>
    %cst_26 = arith.constant 0.000000e+00 : f32
    %80 = vector.broadcast %cst_26 : f32 to vector<8x32xf32>
    %81 = arith.maximumf %79, %80 : vector<8x32xf32>
    %82 = vector.extract_strided_slice %0 {offsets = [3, 0], sizes = [1, 32], strides = [1, 1]} : vector<16x128xf32> to vector<1x32xf32>
    %83 = vector.broadcast %82 : vector<1x32xf32> to vector<32x32xf32>
    %84 = arith.mulf %15, %83 : vector<32x32xf32>
    %cst_27 = arith.constant dense<0.000000e+00> : vector<32xf32>
    %85 = vector.multi_reduction <add>, %84, %cst_27 [1] : vector<32x32xf32> to vector<32xf32>
    %86 = vector.shape_cast %85 : vector<32xf32> to vector<32x1xf32>
    %87 = vector.extract_strided_slice %15 {offsets = [0, 0], sizes = [12, 32], strides = [1, 1]} : vector<32x32xf32> to vector<12x32xf32>
    %88 = vector.extract_strided_slice %0 {offsets = [2, 0], sizes = [1, 32], strides = [1, 1]} : vector<16x128xf32> to vector<1x32xf32>
    %cst_28 = arith.constant dense<0.000000e+00> : vector<1x12xf32>
    %89 = tpu.matmul %88, %87, %cst_28 {dimension_numbers = #tpu.dot_dimension_numbers<[1], [1], [0], [0], [0, 0, 1, 0], [], []>} : vector<1x32xf32>, vector<12x32xf32>, vector<1x12xf32> -> vector<1x12xf32>
    %90 = vector.broadcast %86 : vector<32x1xf32> to vector<32x12xf32>
    %91 = vector.broadcast %89 : vector<1x12xf32> to vector<32x12xf32>
    %92 = arith.addf %90, %91 : vector<32x12xf32>
    %cst_29 = arith.constant 0.000000e+00 : f32
    %93 = vector.broadcast %cst_29 : f32 to vector<32x12xf32>
    %94 = arith.cmpf ogt, %92, %93 : vector<32x12xf32>
    %cst_30 = arith.constant 2.000000e-01 : f32
    %95 = vector.broadcast %cst_30 : f32 to vector<32x12xf32>
    %96 = arith.mulf %95, %92 : vector<32x12xf32>
    %97 = arith.select %94, %92, %96 : vector<32x12xi1>, vector<32x12xf32>
    %cst_31 = arith.constant 1.000000e+00 : f32
    %98 = vector.broadcast %cst_31 : f32 to vector<32x12xf32>
    %99 = arith.subf %4, %98 : vector<32x12xf32>
    %cst_32 = arith.constant 1.000000e+30 : f32
    %100 = vector.broadcast %cst_32 : f32 to vector<32x12xf32>
    %101 = arith.mulf %99, %100 : vector<32x12xf32>
    %102 = arith.addf %97, %101 : vector<32x12xf32>
    %cst_33 = arith.constant dense<0xFF800000> : vector<32xf32>
    %103 = vector.multi_reduction <maximumf>, %102, %cst_33 [1] : vector<32x12xf32> to vector<32xf32>
    %104 = vector.shape_cast %103 : vector<32xf32> to vector<32x1xf32>
    %105 = vector.broadcast %104 : vector<32x1xf32> to vector<32x12xf32>
    %106 = arith.subf %102, %105 : vector<32x12xf32>
    %107 = math.exp %106 : vector<32x12xf32>
    %108 = arith.mulf %107, %4 : vector<32x12xf32>
    %cst_34 = arith.constant dense<0.000000e+00> : vector<32xf32>
    %109 = vector.multi_reduction <add>, %108, %cst_34 [1] : vector<32x12xf32> to vector<32xf32>
    %110 = vector.shape_cast %109 : vector<32xf32> to vector<32x1xf32>
    %cst_35 = arith.constant 0.000000e+00 : f32
    %111 = vector.broadcast %cst_35 : f32 to vector<32x1xf32>
    %112 = arith.cmpf ogt, %110, %111 : vector<32x1xf32>
    %cst_36 = arith.constant 1.000000e+00 : f32
    %113 = vector.broadcast %cst_36 : f32 to vector<32x1xf32>
    %114 = arith.select %112, %110, %113 : vector<32x1xi1>, vector<32x1xf32>
    %115 = tpu.reciprocal %114 {approx = true} : vector<32x1xf32> -> vector<32x1xf32>
    %116 = vector.broadcast %115 : vector<32x1xf32> to vector<32x12xf32>
    %117 = arith.mulf %108, %116 : vector<32x12xf32>
    %cst_37 = arith.constant dense<0.000000e+00> : vector<32x32xf32>
    %118 = tpu.matmul %117, %87, %cst_37 {dimension_numbers = #tpu.dot_dimension_numbers<[1], [0], [0], [1], [0, 0, 1, 1], [], []>} : vector<32x12xf32>, vector<12x32xf32>, vector<32x32xf32> -> vector<32x32xf32>
    %119 = arith.addf %13, %118 : vector<32x32xf32>
    %cst_38 = arith.constant 0.000000e+00 : f32
    %120 = vector.broadcast %cst_38 : f32 to vector<32x32xf32>
    %121 = arith.maximumf %119, %120 : vector<32x32xf32>
    %c32 = arith.constant 32 : index
    %c0_39 = arith.constant 0 : index
    %122 = vector.load %arg3[%c32, %c0_39] : memref<144x128xf32, #tpu.memory_space<vmem>>, vector<32x128xf32>
    %cst_40 = arith.constant dense<0.000000e+00> : vector<8x128xf32>
    %123 = tpu.matmul %81, %122, %cst_40 {dimension_numbers = #tpu.dot_dimension_numbers<[1], [0], [0], [1], [0, 0, 1, 1], [], []>} : vector<8x32xf32>, vector<32x128xf32>, vector<8x128xf32> -> vector<8x128xf32>
    %124 = vector.extract_strided_slice %123 {offsets = [0, 0], sizes = [8, 32], strides = [1, 1]} : vector<8x128xf32> to vector<8x32xf32>
    %125 = vector.extract_strided_slice %123 {offsets = [0, 32], sizes = [8, 32], strides = [1, 1]} : vector<8x128xf32> to vector<8x32xf32>
    %126 = vector.extract_strided_slice %123 {offsets = [0, 64], sizes = [8, 32], strides = [1, 1]} : vector<8x128xf32> to vector<8x32xf32>
    %c64 = arith.constant 64 : index
    %c0_41 = arith.constant 0 : index
    %127 = vector.load %arg3[%c64, %c0_41] : memref<144x128xf32, #tpu.memory_space<vmem>>, vector<32x128xf32>
    %cst_42 = arith.constant dense<0.000000e+00> : vector<32x128xf32>
    %128 = tpu.matmul %121, %127, %cst_42 {dimension_numbers = #tpu.dot_dimension_numbers<[1], [0], [0], [1], [0, 0, 1, 1], [], []>} : vector<32x32xf32>, vector<32x128xf32>, vector<32x128xf32> -> vector<32x128xf32>
    %129 = vector.extract_strided_slice %128 {offsets = [0, 0], sizes = [12, 32], strides = [1, 1]} : vector<32x128xf32> to vector<12x32xf32>
    %130 = vector.extract_strided_slice %128 {offsets = [12, 32], sizes = [20, 32], strides = [1, 1]} : vector<32x128xf32> to vector<20x32xf32>
    %131 = vector.extract_strided_slice %0 {offsets = [6, 0], sizes = [1, 32], strides = [1, 1]} : vector<16x128xf32> to vector<1x32xf32>
    %132 = vector.broadcast %131 : vector<1x32xf32> to vector<8x32xf32>
    %133 = arith.mulf %125, %132 : vector<8x32xf32>
    %cst_43 = arith.constant dense<0.000000e+00> : vector<8xf32>
    %134 = vector.multi_reduction <add>, %133, %cst_43 [1] : vector<8x32xf32> to vector<8xf32>
    %135 = vector.shape_cast %134 : vector<8xf32> to vector<8x1xf32>
    %136 = vector.extract_strided_slice %0 {offsets = [8, 0], sizes = [1, 32], strides = [1, 1]} : vector<16x128xf32> to vector<1x32xf32>
    %137 = vector.broadcast %136 : vector<1x32xf32> to vector<8x32xf32>
    %138 = arith.mulf %126, %137 : vector<8x32xf32>
    %cst_44 = arith.constant dense<0.000000e+00> : vector<8xf32>
    %139 = vector.multi_reduction <add>, %138, %cst_44 [1] : vector<8x32xf32> to vector<8xf32>
    %140 = vector.shape_cast %139 : vector<8xf32> to vector<8x1xf32>
    %141 = vector.extract_strided_slice %0 {offsets = [5, 0], sizes = [1, 32], strides = [1, 1]} : vector<16x128xf32> to vector<1x32xf32>
    %cst_45 = arith.constant dense<0.000000e+00> : vector<1x12xf32>
    %142 = tpu.matmul %141, %129, %cst_45 {dimension_numbers = #tpu.dot_dimension_numbers<[1], [1], [0], [0], [0, 0, 1, 0], [], []>} : vector<1x32xf32>, vector<12x32xf32>, vector<1x12xf32> -> vector<1x12xf32>
    %143 = vector.broadcast %135 : vector<8x1xf32> to vector<8x12xf32>
    %144 = vector.broadcast %142 : vector<1x12xf32> to vector<8x12xf32>
    %145 = arith.addf %143, %144 : vector<8x12xf32>
    %cst_46 = arith.constant 0.000000e+00 : f32
    %146 = vector.broadcast %cst_46 : f32 to vector<8x12xf32>
    %147 = arith.cmpf ogt, %145, %146 : vector<8x12xf32>
    %cst_47 = arith.constant 2.000000e-01 : f32
    %148 = vector.broadcast %cst_47 : f32 to vector<8x12xf32>
    %149 = arith.mulf %148, %145 : vector<8x12xf32>
    %150 = arith.select %147, %145, %149 : vector<8x12xi1>, vector<8x12xf32>
    %cst_48 = arith.constant 1.000000e+00 : f32
    %151 = vector.broadcast %cst_48 : f32 to vector<8x12xf32>
    %152 = arith.subf %2, %151 : vector<8x12xf32>
    %cst_49 = arith.constant 1.000000e+30 : f32
    %153 = vector.broadcast %cst_49 : f32 to vector<8x12xf32>
    %154 = arith.mulf %152, %153 : vector<8x12xf32>
    %155 = arith.addf %150, %154 : vector<8x12xf32>
    %cst_50 = arith.constant dense<0xFF800000> : vector<8xf32>
    %156 = vector.multi_reduction <maximumf>, %155, %cst_50 [1] : vector<8x12xf32> to vector<8xf32>
    %157 = vector.shape_cast %156 : vector<8xf32> to vector<8x1xf32>
    %158 = vector.broadcast %157 : vector<8x1xf32> to vector<8x12xf32>
    %159 = arith.subf %155, %158 : vector<8x12xf32>
    %160 = math.exp %159 : vector<8x12xf32>
    %161 = arith.mulf %160, %2 : vector<8x12xf32>
    %cst_51 = arith.constant dense<0.000000e+00> : vector<8xf32>
    %162 = vector.multi_reduction <add>, %161, %cst_51 [1] : vector<8x12xf32> to vector<8xf32>
    %163 = vector.shape_cast %162 : vector<8xf32> to vector<8x1xf32>
    %cst_52 = arith.constant 0.000000e+00 : f32
    %164 = vector.broadcast %cst_52 : f32 to vector<8x1xf32>
    %165 = arith.cmpf ogt, %163, %164 : vector<8x1xf32>
    %cst_53 = arith.constant 1.000000e+00 : f32
    %166 = vector.broadcast %cst_53 : f32 to vector<8x1xf32>
    %167 = arith.select %165, %163, %166 : vector<8x1xi1>, vector<8x1xf32>
    %168 = tpu.reciprocal %167 {approx = true} : vector<8x1xf32> -> vector<8x1xf32>
    %169 = vector.broadcast %168 : vector<8x1xf32> to vector<8x12xf32>
    %170 = arith.mulf %161, %169 : vector<8x12xf32>
    %cst_54 = arith.constant dense<0.000000e+00> : vector<8x32xf32>
    %171 = tpu.matmul %170, %129, %cst_54 {dimension_numbers = #tpu.dot_dimension_numbers<[1], [0], [0], [1], [0, 0, 1, 1], [], []>} : vector<8x12xf32>, vector<12x32xf32>, vector<8x32xf32> -> vector<8x32xf32>
    %172 = vector.extract_strided_slice %0 {offsets = [7, 0], sizes = [1, 32], strides = [1, 1]} : vector<16x128xf32> to vector<1x32xf32>
    %cst_55 = arith.constant dense<0.000000e+00> : vector<1x20xf32>
    %173 = tpu.matmul %172, %130, %cst_55 {dimension_numbers = #tpu.dot_dimension_numbers<[1], [1], [0], [0], [0, 0, 1, 0], [], []>} : vector<1x32xf32>, vector<20x32xf32>, vector<1x20xf32> -> vector<1x20xf32>
    %174 = vector.broadcast %140 : vector<8x1xf32> to vector<8x20xf32>
    %175 = vector.broadcast %173 : vector<1x20xf32> to vector<8x20xf32>
    %176 = arith.addf %174, %175 : vector<8x20xf32>
    %cst_56 = arith.constant 0.000000e+00 : f32
    %177 = vector.broadcast %cst_56 : f32 to vector<8x20xf32>
    %178 = arith.cmpf ogt, %176, %177 : vector<8x20xf32>
    %cst_57 = arith.constant 2.000000e-01 : f32
    %179 = vector.broadcast %cst_57 : f32 to vector<8x20xf32>
    %180 = arith.mulf %179, %176 : vector<8x20xf32>
    %181 = arith.select %178, %176, %180 : vector<8x20xi1>, vector<8x20xf32>
    %cst_58 = arith.constant 1.000000e+00 : f32
    %182 = vector.broadcast %cst_58 : f32 to vector<8x20xf32>
    %183 = arith.subf %3, %182 : vector<8x20xf32>
    %cst_59 = arith.constant 1.000000e+30 : f32
    %184 = vector.broadcast %cst_59 : f32 to vector<8x20xf32>
    %185 = arith.mulf %183, %184 : vector<8x20xf32>
    %186 = arith.addf %181, %185 : vector<8x20xf32>
    %cst_60 = arith.constant dense<0xFF800000> : vector<8xf32>
    %187 = vector.multi_reduction <maximumf>, %186, %cst_60 [1] : vector<8x20xf32> to vector<8xf32>
    %188 = vector.shape_cast %187 : vector<8xf32> to vector<8x1xf32>
    %189 = vector.broadcast %188 : vector<8x1xf32> to vector<8x20xf32>
    %190 = arith.subf %186, %189 : vector<8x20xf32>
    %191 = math.exp %190 : vector<8x20xf32>
    %192 = arith.mulf %191, %3 : vector<8x20xf32>
    %cst_61 = arith.constant dense<0.000000e+00> : vector<8xf32>
    %193 = vector.multi_reduction <add>, %192, %cst_61 [1] : vector<8x20xf32> to vector<8xf32>
    %194 = vector.shape_cast %193 : vector<8xf32> to vector<8x1xf32>
    %cst_62 = arith.constant 0.000000e+00 : f32
    %195 = vector.broadcast %cst_62 : f32 to vector<8x1xf32>
    %196 = arith.cmpf ogt, %194, %195 : vector<8x1xf32>
    %cst_63 = arith.constant 1.000000e+00 : f32
    %197 = vector.broadcast %cst_63 : f32 to vector<8x1xf32>
    %198 = arith.select %196, %194, %197 : vector<8x1xi1>, vector<8x1xf32>
    %199 = tpu.reciprocal %198 {approx = true} : vector<8x1xf32> -> vector<8x1xf32>
    %200 = vector.broadcast %199 : vector<8x1xf32> to vector<8x20xf32>
    %201 = arith.mulf %192, %200 : vector<8x20xf32>
    %cst_64 = arith.constant dense<0.000000e+00> : vector<8x32xf32>
    %202 = tpu.matmul %201, %130, %cst_64 {dimension_numbers = #tpu.dot_dimension_numbers<[1], [0], [0], [1], [0, 0, 1, 1], [], []>} : vector<8x20xf32>, vector<20x32xf32>, vector<8x32xf32> -> vector<8x32xf32>
    %203 = vector.extract_strided_slice %0 {offsets = [9, 0], sizes = [1, 32], strides = [1, 1]} : vector<16x128xf32> to vector<1x32xf32>
    %204 = vector.broadcast %203 : vector<1x32xf32> to vector<8x32xf32>
    %205 = arith.addf %124, %204 : vector<8x32xf32>
    %206 = arith.addf %205, %171 : vector<8x32xf32>
    %207 = arith.addf %206, %202 : vector<8x32xf32>
    %c96 = arith.constant 96 : index
    %c0_65 = arith.constant 0 : index
    %208 = vector.load %arg3[%c96, %c0_65] : memref<144x128xf32, #tpu.memory_space<vmem>>, vector<32x128xf32>
    %cst_66 = arith.constant dense<0.000000e+00> : vector<8x128xf32>
    %209 = tpu.matmul %207, %208, %cst_66 {dimension_numbers = #tpu.dot_dimension_numbers<[1], [0], [0], [1], [0, 0, 1, 1], [], []>} : vector<8x32xf32>, vector<32x128xf32>, vector<8x128xf32> -> vector<8x128xf32>
    %210 = vector.extract_strided_slice %0 {offsets = [10, 0], sizes = [1, 128], strides = [1, 1]} : vector<16x128xf32> to vector<1x128xf32>
    %211 = vector.broadcast %210 : vector<1x128xf32> to vector<8x128xf32>
    %212 = arith.addf %209, %211 : vector<8x128xf32>
    %c0_67 = arith.constant 0 : index
    %c0_68 = arith.constant 0 : index
    %213 = vector.load %arg4[%c0_67, %c0_68] : memref<8x128xf32, #tpu.memory_space<vmem>>, vector<8x128xf32>
    tpu.vector_store %arg4[%c0_67, %c0_68], %212 {strides = array<i32>} : memref<8x128xf32, #tpu.memory_space<vmem>>, vector<8x128xf32>,
    return
  }
  func.func @transform_0(%arg0: i32) -> (i32, i32) {
    %c0_i32 = arith.constant 0 : i32
    %c0_i32_0 = arith.constant 0 : i32
    %c0_i32_1 = arith.constant 0 : i32
    return %c0_i32, %c0_i32_0 : i32, i32
  }
  func.func @transform_1(%arg0: i32) -> (i32, i32) {
    %c0_i32 = arith.constant 0 : i32
    %c0_i32_0 = arith.constant 0 : i32
    %c0_i32_1 = arith.constant 0 : i32
    return %c0_i32, %c0_i32_0 : i32, i32
  }
  func.func @transform_2(%arg0: i32) -> (i32, i32) {
    %c0_i32 = arith.constant 0 : i32
    %c0_i32_0 = arith.constant 0 : i32
    %c0_i32_1 = arith.constant 0 : i32
    return %c0_i32, %c0_i32_0 : i32, i32
  }
  func.func @transform_3(%arg0: i32) -> (i32, i32) {
    %c0_i32 = arith.constant 0 : i32
    %c0_i32_0 = arith.constant 0 : i32
    %c0_i32_1 = arith.constant 0 : i32
    return %c0_i32, %c0_i32_0 : i32, i32
  }
}

</mosaic_0001>

<bundles_post_ra>
// kernel: randgr_forward.1
= control target key start
LH: loop header
LB: loop body
LE: loop exit
PB: predicated region body
PF: predicated region fallthrough
CT: control target
= control target key end

     0   :  { %8 = vsyncpa [#allocation3], 0  ;;  %s2353_s0 = inlined_call_operand.vmem [shape: s32[32,1], index: 0, kind: input, shape index: {}]   ;;  %s2354_s1 = inlined_call_operand.vmem [shape: f32[32,128], index: 1, kind: input, shape index: {}]   ;;  %s2355_s2 = inlined_call_operand.hbm [shape: f32[144,128], index: 2, kind: input, shape index: {}]   ;;  %s2356_s3 = inlined_call_operand.hbm [shape: f32[8,128], index: 3, kind: output, shape index: {}]  }
   0x1   :  { %9 = vsyncpa [#allocation4], 0  ;;  %s2017_s12 = smov [#allocation2]   ;;  %s1969_s16 = scalar_lea.hbm %s2355_s2, 2304 }
   0x2   :  { %s19_s13 = sshll.u32 %s2017_s12, 4  ;;  %p1970_p0 = scmp.ne.s32.totalorder %s2355_s2, %s1969_s16  ;;  %s20_s13 = int_to_ptr.vmem [resolvable:$true] %s19_s13 }
   0x3   :  { %p1973_p1 = scmp.lt.u32.totalorder %s1969_s16, %s2355_s2 }
   0x5   :  { %p1975_p2 = pnand %p1973_p1, %p1970_p0 }
   0x7   :  { %1978 = shalt.err (!%p1975_p2)
}
   0x8   :  { %s1979_s21 = scalar_lea.vmem %s20_s13, 2304  ;;  %p1984_p4 = scmp.lt.s32.totalorder %s20_s13, %s20_s13 }
   0x9   :  { %p1980_p3 = scmp.ne.s32.totalorder %s20_s13, %s1979_s21  ;;  %p1985_p5 = scmp.lt.s32.totalorder %s1979_s21, %s1979_s21 }
   0xb   :  { %p1986_p6 = por %p1985_p5, %p1984_p4 }
   0xd   :  { %p1987_p7 = pnand %p1986_p6, %p1980_p3 }
   0xf   :  { %1990 = shalt.err (!%p1987_p7)
}
  0x10   :  { %s2018_s22 = smov 128   ;;  %s2019_s23 = smov 8  }
  0x11   :  { %25 = dma.hbm_to_vmem [thread:$0]  %s2355_s2, 2304, %s20_s13, [#allocation3], %s2018_s22, %s2018_s22, %s2019_s23  }
  0x12   :  { %2013 = dma.done.wait [#allocation3], 2304  }
  0x13   :  { %2014 = vsyncadd [#allocation3], 4294964992  ;;  %v2020_v0 = vmov 0   ;;  %v39_v1 = vld [vmem:[%s2353_s0 + $0x10] sm:$0xff]  ;;  %v37_v2 = vld [vmem:[%s2353_s0] sm:$0xff]  ;;  %v35_v11 = vlaneseq  ;;  %vm69_vm0 = vcmask 261120  }
  0x14   :  { %1916 = vset.pattern.permute.xlu1 %v2020_v0  ;;  %1915 = vset.pattern.permute.xlu0 %v2020_v0  ;;  %v40_v3 = vld [vmem:[%s2353_s0 + $0x18] sm:$0xff]  ;;  %v65_v4 = vld [vmem:[#allocation2] sm:$0xff]  ;;  %v66_v5 = vld [vmem:[#allocation2 + $0x8] sm:$0xff]  ;;  %v2021_v15 = vmov 0.0   ;;  %v2022_v22 = vmov 0.0|0.0   ;;  %vm2023_vm5 = vmmov 0  }
  0x15   :  { %48 = vperm.xlu1 %1916, %v39_v1   ;;  %42 = vperm.xlu0 %1915, %v37_v2   ;;  %v38_v6 = vld [vmem:[%s2353_s0 + $0x8] sm:$0xff]  ;;  %v1829_v7 = vpack.c.bf16 %v66_v5, %v65_v4  ;;  %v67_v8 = vld [vmem:[#allocation2 + $0x10] sm:$0xff]  ;;  %v68_v9 = vld [vmem:[#allocation2 + $0x18] sm:$0xff]  ;;  %v36_v12 = vand.u32 127, %v35_v11  ;;  %s2024_s0 = smov 96   ;;  %vm279_vm6 = vcmask 1043456  }
  0x16   :  { %v1833_v10 = vpack.c.bf16 %v68_v9, %v67_v8  ;;  %1837 = vmatprep.subr.bf16.mxu1 %v2022_v22  ;;  %1716 = vmatprep.mubr.msk.f32.mxu1 %vm2023_vm5, %v2021_v15  ;;  %v2112_v34 = vld [vmem:[%s2354_s1] sm:$0xff]  ;;  %vm2121_vm7 = vmpackc.low %vm69_vm0, %vm69_vm0  ;;  %vm2025_vm8 = vmmov 1   ;;  %v2155_v50 = vshrl.u32 %v35_v11, 7  ;;  %vm260_vm11 = vcmask 97280   ;;  %s2026_s8 = smov 64   ;;  %s2028_s15 = smov [#allocation5]  }
  0x17   :  { %1830 = vmatprep.subr.bf16.mxu0 %v1829_v7  ;;  %v1598_v35 = vadd.f32 -1.0, %v2112_v34  ;;  %v2128_v45 = vld [vmem:[#allocation2 + $0x80] sm:$0xff]  ;;  %vm2133_vm9 = vmpackc.low %vm279_vm6, %vm2025_vm8  ;;  %vm456_vm13 = vcmask 162816   ;;  %s1578_s16 = sshll.u32 %s2028_s15, 4  ;;  %s1579_s16 = int_to_ptr.vmem [resolvable:$true] %s1578_s16 }
  0x18   :  { %1832 = vmatpush3.bf16.msra.mxu0 %v1829_v7  ;;  %v352_v49 = vrot.slane %v2128_v45, 1  ;;  %v2158_v52 = vsub.s32 0, %v2155_v50  ;;  %s1991_s17 = scalar_lea.vmem %s1579_s16, 128  ;;  %p1996_p9 = scmp.lt.s32.totalorder %s1579_s16, %s1579_s16 }
  0x19   :  { %51 = vperm.xlu1 %1916, %v40_v3   ;;  %45 = vperm.xlu0 %1915, %v38_v6   ;;  %v2115_v36 = vmul.f32 1e+30, %v1598_v35  ;;  %v561_v3 = vsub.s32 3, %v2155_v50  ;;  %p1992_p8 = scmp.ne.s32.totalorder %s1579_s16, %s1991_s17  ;;  %p1997_p10 = scmp.lt.s32.totalorder %s1991_s17, %s1991_s17 }
  0x1a   :  { %1834 = vmatprep.subr.bf16.mxu0 %v1833_v10 }
  0x1b   :  { %v562_v4 = vrot.slane %v2128_v45, %v561_v3  ;;  %p1998_p11 = por %p1997_p10, %p1996_p9 }
  0x1c   :  { %1836 = vmatpush3.bf16.msra.mxu0 %v1833_v10 }
  0x1d   :  { %1845 = vmatprep.subr.bf16.mxu0 %v2022_v22  ;;  %p1999_p12 = pnand %p1998_p11, %p1992_p8 }
  0x94   :  { %v49_v13 = vpop.permute.xlu1 %48  ;;  %v43_v14 = vpop.permute.xlu0 %42 }
  0x95   :  { %vm53_vm1 = vcmp.eq.s32.totalorder %v36_v12, %v43_v14  ;;  %vm55_vm2 = vcmp.eq.s32.totalorder %v36_v12, %v49_v13 }
  0x96   :  { %v1587_v16 = vsel %vm53_vm1, 1.0, %v2021_v15  ;;  %v1589_v19 = vsel %vm55_vm2, 1.0, %v2021_v15 }
  0x97   :  { %1706 = vmatprep.mubr.msk.f32.mxu0 %vm69_vm0, %v1587_v16 }
  0x98   :  { %v52_v17 = vpop.permute.xlu1 %51  ;;  %v46_v18 = vpop.permute.xlu0 %45 }
  0x99   :  { %vm54_vm3 = vcmp.eq.s32.totalorder %v36_v12, %v46_v18  ;;  %vm56_vm4 = vcmp.eq.s32.totalorder %v36_v12, %v52_v17 }
  0x9a   :  { %v1588_v20 = vsel %vm54_vm3, 1.0, %v2021_v15  ;;  %v1590_v21 = vsel %vm56_vm4, 1.0, %v2021_v15 }
  0x9b   :  { %1707 = vmatmul.mubr.msk.f32.vlgmr.msra.gmra.mrb[0].mxu0 %vm69_vm0, %v1588_v20 }
  0x9c   :  { %1709 = vmatprep.mubr.msk.f32.mxu0 %vm69_vm0, %v1589_v19 }
  0x9f   :  { %1710 = vmatmul.mubr.msk.f32.gmra.mrb[2].mxu0 %vm69_vm0, %v1590_v21 }
  0xa0   :  { %1732 = vmatprep.mubr.msk.f32.mxu0 %vm2023_vm5, %v2021_v15 }
 0x16e   :  { %v2084_v23 = vpop.f32.mrb[0].mxu0 }
 0x16f   :  { %v2086_v24 = vpop.f32.mrb[1].mxu0  ;;  %v355_v29 = vrot.slane %v2084_v23, 4 }
 0x170   :  { %v2094_v25 = vpack.i.bf16 %v2084_v23, %v2086_v24 }
 0x172   :  { %1918 = vrot.lane.b32.xlu0 %v2094_v25, %s2024_s0  ;;  %v2098_v26 = vpop.f32.mrb[2].mxu0 }
 0x173   :  { %v358_v27 = vrot.slane %v2098_v26, 4  ;;  %v2101_v28 = vpop.f32.mrb[3].mxu0 }
 0x174   :  { %v356_v30 = vrot.slane %v2101_v28, 4 }
 0x176   :  { %364 = vrot.lane.b32.xlu0 %v358_v27, %s2024_s0  ;;  %v357_v31 = vsel %vm279_vm6, %v355_v29, %v356_v30  ;;  %v359_v32 = vsel %vm279_vm6, %v356_v30, %v358_v27 }
 0x177   :  { %v1922_v33 = vpack.i.bf16 %v359_v32, %v357_v31 }
 0x179   :  { %1923 = vrot.lane.b32.xlu1 %v1922_v33, %s2024_s0 }
 0x17d   :  { %452 = vrot.lane.b32.xlu1 %v2115_v36, %s2024_s0 }
 0x1e4   :  { %v1919_v37 = vpop.permute.xlu0 %1918 }
 0x1e5   :  { %v1921_v38 = vunpack.i.h.bf16 %v1919_v37  ;;  %v1920_v39 = vunpack.i.l.bf16 %v1919_v37 }
 0x1e7   :  { %v1838_v41 = vpack.c.bf16 %v1921_v38, %v1920_v39  ;;  %v2198_v38 = vld [vmem:[%s2354_s1 + $0x10] sm:$0xff] }
 0x1e8   :  { %v2148_v48 = vpop.permute.xlu0 %364 }
 0x1e9   :  { %1840 = vmatpush3.bf16.xpose.msk.msra.mxu1 %vm2121_vm7, %v1838_v41 }
 0x1ea   :  { %1841 = vmatprep.subr.bf16.mxu1 %v2022_v22 }
 0x1eb   :  { %v1924_v42 = vpop.permute.xlu1 %1923 }
 0x1ec   :  { %v1926_v43 = vunpack.i.h.bf16 %v1924_v42  ;;  %v1925_v44 = vunpack.i.l.bf16 %v1924_v42 }
 0x1ee   :  { %v2130_v46 = vpack.c.bf16 %v1926_v43, %v1925_v44 }
 0x1ef   :  { %v2163_v63 = vpop.permute.xlu1 %452 }
 0x1f0   :  { %1717 = vmatmul.mubr.msk.f32.vlgmr.msra.gmra.mrb[0].mxu1 %vm69_vm0, %v2128_v45  ;;  %1848 = vmatpush3.bf16.xpose.msk.msra.mxu0 %vm2121_vm7, %v2130_v46 }
 0x1f1   :  { %1844 = vmatpush3.bf16.msk.msra.mxu1 %vm2133_vm9, %v1838_v41  ;;  %1730 = vmatprep.subr.mxu0 %v2021_v15  ;;  %v1611_v41 = vadd.f32 -1.0, %v2198_v38 }
 0x1f2   :  { %1723 = vmatprep.mubr.msk.f32.mxu1 %vm2023_vm5, %v2021_v15  ;;  %1849 = vmatprep.subr.bf16.mxu1 %v2022_v22 }
 0x1f3   :  { %v704_v43 = vmul.f32 1e+30, %v1611_v41 }
 0x1f8   :  { %1731 = vmatpush3.xpose.msk.msra.mxu0 %vm69_vm0, %v2148_v48 }
 0x1fb   :  { %1733 = vmatmul.mubr.msk.f32.vlgmr.msra.gmra.mrb[4].mxu0 %vm69_vm0, %v352_v49 }
 0x2c3   :  { %v246_v51 = vpop.f32.mrb[0].mxu1 }
 0x2c4   :  { %vm250_vm10 = vcmp.gt.f32.partialorder %v246_v51, 0.0  ;;  %v251_v53 = vmul.f32 0.2, %v246_v51  ;;  %v1718_v54 = vpop.f32.mrb[1].mxu1 }
 0x2c6   :  { %v252_v55 = vsel %vm250_vm10, %v246_v51, %v251_v53 }
 0x2c7   :  { %v258_v56 = vrot.slane %v252_v55, %v2158_v52 }
 0x2c9   :  { %v259_v57 = vadd.f32 %v258_v56, %v2115_v36 }
 0x2cb   :  { %v261_v58 = vsel %vm260_vm11, %v259_v57, -inf }
 0x2cc   :  { %262 = vmax.xlane.f32.xlu0 %v261_v58 }
 0x2ce   :  { %v440_v59 = vpop.f32.mrb[4].mxu0 }
 0x2cf   :  { %vm444_vm12 = vcmp.gt.f32.partialorder %v440_v59, 0.0  ;;  %v445_v60 = vmul.f32 0.2, %v440_v59  ;;  %v1734_v61 = vpop.f32.mrb[5].mxu0 }
 0x2d1   :  { %v446_v62 = vsel %vm444_vm12, %v440_v59, %v445_v60 }
 0x2d2   :  { %v450_v0 = vrot.slane %v446_v62, %v2158_v52 }
 0x2d4   :  { %v455_v1 = vadd.f32 %v2163_v63, %v450_v0  ;;  %v34_v0 = vld [vmem:[%s2354_s1 + $0x18] sm:$0xff] }
 0x2d6   :  { %v457_v2 = vsel %vm456_vm13, %v455_v1, -inf }
 0x2d7   :  { %458 = vmax.xlane.f32.xlu1 %v457_v2 }
 0x2e2   :  { %464 = vrot.lane.b32.xlu0 %v2112_v34, %s2024_s0 }
 0x2e6   :  { %564 = vrot.lane.b32.xlu0 %v562_v4, %s2026_s8 }
 0x359   :  { %v263_v5 = vpop.xlane.xlu0 %262 }
 0x35a   :  { %v264_v6 = vsub.f32 %v259_v57, %v263_v5 }
 0x35c   :  { %v265_v7 = vmul.f32 1.442695, %v264_v6 }
 0x35d   :  { %v2173_v8 = vpop.permute.xlu0 %464 }
 0x35e   :  { %1937 = vpow2.f32 %v265_v7 }
 0x361   :  { %v565_v9 = vpop.permute.xlu0 %564 }
 0x362   :  { %v567_v10 = vmul.f32 %v565_v9, %v2086_v24  ;;  %v568_v13 = vmul.f32 %v2084_v23, %v565_v9  ;;  %v570_v18 = vmul.f32 %v2098_v26, %v565_v9  ;;  %v569_v29 = vmul.f32 %v565_v9, %v2101_v28 }
 0x364   :  { %v459_v11 = vpop.xlane.xlu1 %458  ;;  %575 = vrot.lane.b32.xlu0 %v567_v10, %s2026_s8 }
 0x365   :  { %v460_v12 = vsub.f32 %v455_v1, %v459_v11  ;;  %v1612_v1 = vadd.f32 -1.0, %v34_v0 }
 0x367   :  { %v461_v14 = vmul.f32 1.442695, %v460_v12  ;;  %v705_v2 = vmul.f32 1e+30, %v1612_v1 }
 0x368   :  { %v1938_v16 = vpop.eup %1937  ;;  %577 = vrot.lane.b32.xlu0 %v568_v13, %s2026_s8 }
 0x369   :  { %1939 = vpow2.f32 %v461_v14  ;;  %v267_v17 = vmul.f32 %v1938_v16, %v2112_v34 }
 0x36b   :  { %v268_v19 = vsel %vm260_vm11, %v267_v17, 0.0 }
 0x36c   :  { %269 = vadd.xlane.f32.xlu1 %v268_v19  ;;  %581 = vrot.lane.b32.xlu0 %v570_v18, %s2026_s8 }
 0x373   :  { %v1940_v20 = vpop.eup %1939 }
 0x374   :  { %v467_v21 = vmul.f32 %v1940_v20, %v2173_v8 }
 0x376   :  { %v468_v27 = vsel %vm456_vm13, %v467_v21, 0.0 }
 0x377   :  { %469 = vadd.xlane.f32.xlu1 %v468_v27 }
 0x388   :  { %1928 = vrot.lane.b32.xlu1 %v2094_v25, %s2026_s8  ;;  %v32_v25 = vld [vmem:[%s2354_s1 + $0x8] sm:$0xff]  ;;  %s2027_s1 = smov 32  }
 0x389   :  { %v1610_v39 = vadd.f32 -1.0, %v32_v25 }
 0x38b   :  { %v703_v42 = vmul.f32 1e+30, %v1610_v39 }
 0x38c   :  { %579 = vrot.lane.b32.xlu1 %v569_v29, %s2026_s8 }
 0x3d6   :  { %v576_v30 = vpop.permute.xlu0 %575 }
 0x3d7   :  { %v587_v31 = vsel %vm69_vm0, %v576_v30, 0.0 }
 0x3d8   :  { %588 = vadd.xlane.f32.xlu1 %v587_v31 }
 0x3da   :  { %v578_v32 = vpop.permute.xlu0 %577 }
 0x3db   :  { %v590_v33 = vsel %vm69_vm0, %v578_v32, 0.0 }
 0x3dc   :  { %591 = vadd.xlane.f32.xlu0 %v590_v33 }
 0x3de   :  { %v582_v35 = vpop.permute.xlu0 %581 }
 0x3df   :  { %v596_v37 = vsel %vm69_vm0, %v582_v35, 0.0 }
 0x3e0   :  { %597 = vadd.xlane.f32.xlu1 %v596_v37 }
 0x3f1   :  { %711 = vrot.lane.b32.xlu1 %v703_v42, %s2026_s8 }
 0x3f5   :  { %713 = vrot.lane.b32.xlu1 %v704_v43, %s2026_s8 }
 0x3f9   :  { %v270_v44 = vpop.xlane.xlu1 %269  ;;  %754 = vrot.lane.b32.xlu1 %v32_v25, %s2026_s8 }
 0x3fa   :  { %vm271_vm14 = vcmp.gt.f32.partialorder %v270_v44, 0.0 }
 0x3fb   :  { %v272_v49 = vsel %vm271_vm14, %v270_v44, 1.0 }
 0x3fc   :  { %1941 = vrcp.f32 %v272_v49 }
 0x404   :  { %v470_v51 = vpop.xlane.xlu1 %469 }
 0x405   :  { %vm471_vm15 = vcmp.gt.f32.partialorder %v470_v51, 0.0 }
 0x406   :  { %v1942_v53 = vpop.eup %1941  ;;  %v472_v54 = vsel %vm471_vm15, %v470_v51, 1.0 }
 0x407   :  { %1943 = vrcp.f32 %v472_v54  ;;  %v274_v55 = vmul.f32 %v1942_v53, %v267_v17 }
 0x408   :  { %v1929_v56 = vpop.permute.xlu1 %1928 }
 0x409   :  { %v1931_v57 = vunpack.i.h.bf16 %v1929_v56  ;;  %v1930_v58 = vunpack.i.l.bf16 %v1929_v56  ;;  %1724 = vmatmul.mubr.msk.f32.vlgmr.msra.gmra.mrb[2].mxu1 %vm260_vm11, %v274_v55 }
 0x40a   :  { %1851 = vmatpush3.bf16.msra.mxu1 %v2130_v46  ;;  %1741 = vmatprep.mubr.msk.f32.mxu1 %vm2023_vm5, %v2021_v15 }
 0x40b   :  { %v1853_v59 = vpack.c.bf16 %v1931_v57, %v1930_v58  ;;  %1739 = vmatprep.subr.mxu1 %v2021_v15 }
 0x40c   :  { %v580_v60 = vpop.permute.xlu1 %579 }
 0x40d   :  { %1858 = vmatprep.subr.msk.bf16.mxu0 %vm2133_vm9, %v1853_v59  ;;  %v593_v61 = vsel %vm69_vm0, %v580_v60, 0.0 }
 0x40e   :  { %1740 = vmatpush3.msk.msra.mxu1 %vm279_vm6, %v2148_v48  ;;  %1861 = vmatpush3.bf16.msk.msra.mxu0 %vm2133_vm9, %v1853_v59  ;;  %v599_v48 = vrot.slane %v2128_v45, 2 }
 0x40f   :  { %594 = vadd.xlane.f32.xlu0 %v593_v61  ;;  %1852 = vmatprep.subr.bf16.mxu1 %v2022_v22 }
 0x410   :  { %1862 = vmatprep.subr.bf16.mxu0 %v2022_v22 }
 0x411   :  { %v1944_v46 = vpop.eup %1943 }
 0x412   :  { %v474_v62 = vmul.f32 %v1944_v46, %v467_v21 }
 0x414   :  { %1742 = vmatmul.mubr.msk.f32.vlgmr.msra.gmra.mrb[2].mxu1 %vm456_vm13, %v474_v62 }
 0x415   :  { %1855 = vmatpush3.bf16.xpose.msk.msra.mxu1 %vm2121_vm7, %v1853_v59  ;;  %1748 = vmatprep.mubr.msk.f32.mxu1 %vm2023_vm5, %v2021_v15 }
 0x41c   :  { %1749 = vmatmul.mubr.msk.f32.vlgmr.msra.gmra.mrb[4].mxu1 %vm69_vm0, %v599_v48 }
 0x425   :  { %709 = vrot.lane.b32.xlu0 %v2115_v36, %s2026_s8 }
 0x429   :  { %715 = vrot.lane.b32.xlu0 %v705_v2, %s2026_s8 }
 0x42d   :  { %752 = vrot.lane.b32.xlu0 %v2112_v34, %s2026_s8 }
 0x465   :  { %v589_v3 = vpop.xlane.xlu1 %588 }
 0x469   :  { %v592_v5 = vpop.xlane.xlu0 %591 }
 0x46d   :  { %v598_v7 = vpop.xlane.xlu1 %597 }
 0x471   :  { %v712_v11 = vpop.permute.xlu1 %711 }
 0x475   :  { %v714_v32 = vpop.permute.xlu1 %713 }
 0x479   :  { %v755_v53 = vpop.permute.xlu1 %754 }
 0x49c   :  { %v595_v9 = vpop.xlane.xlu0 %594 }
 0x4a0   :  { %v710_v14 = vpop.permute.xlu0 %709 }
 0x4a4   :  { %v716_v33 = vpop.permute.xlu0 %715 }
 0x4a8   :  { %v753_v54 = vpop.permute.xlu0 %752 }
 0x4e7   :  { %v2233_v4 = vpop.f32.mrb[2].mxu1 }
 0x4e8   :  { %v1743_v6 = vpop.f32.mrb[3].mxu1 }
 0x4ef   :  { %v676_v10 = vpop.f32.mrb[4].mxu1 }
 0x4f0   :  { %v683_v12 = vrot.slane %v676_v10, %v2158_v52  ;;  %v1750_v13 = vpop.f32.mrb[5].mxu1 }
 0x4f2   :  { %v685_v16 = vadd.f32 %v683_v12, %v592_v5  ;;  %v684_v17 = vadd.f32 %v683_v12, %v589_v3  ;;  %v686_v18 = vadd.f32 %v683_v12, %v595_v9  ;;  %v687_v19 = vadd.f32 %v683_v12, %v598_v7 }
 0x4f4   :  { %vm689_vm1 = vcmp.gt.f32.partialorder %v685_v16, 0.0  ;;  %v693_v20 = vmul.f32 0.2, %v685_v16  ;;  %vm688_vm2 = vcmp.gt.f32.partialorder %v684_v17, 0.0  ;;  %v692_v21 = vmul.f32 0.2, %v684_v17 }
 0x4f5   :  { %vm690_vm3 = vcmp.gt.f32.partialorder %v686_v18, 0.0  ;;  %v694_v27 = vmul.f32 0.2, %v686_v18  ;;  %vm691_vm4 = vcmp.gt.f32.partialorder %v687_v19, 0.0  ;;  %v695_v29 = vmul.f32 0.2, %v687_v19 }
 0x4f6   :  { %v697_v30 = vsel %vm689_vm1, %v685_v16, %v693_v20  ;;  %v696_v31 = vsel %vm688_vm2, %v684_v17, %v692_v21 }
 0x4f7   :  { %v722_v35 = vadd.f32 %v712_v11, %v697_v30  ;;  %v721_v37 = vadd.f32 %v710_v14, %v696_v31  ;;  %v698_v25 = vsel %vm690_vm3, %v686_v18, %v694_v27  ;;  %v699_v39 = vsel %vm691_vm4, %v687_v19, %v695_v29  ;;  %v981_v18 = vld [vmem:[#allocation2 + $0x40] sm:$0xff]  ;;  %v982_v19 = vld [vmem:[#allocation2 + $0x48] sm:$0xff] }
 0x4f8   :  { %v723_v41 = vadd.f32 %v714_v32, %v698_v25  ;;  %v724_v42 = vadd.f32 %v716_v33, %v699_v39  ;;  %v1868_v20 = vpack.c.bf16 %v982_v19, %v981_v18  ;;  %v904_v25 = vld [vmem:[#allocation2 + $0x20] sm:$0xff]  ;;  %v905_v39 = vld [vmem:[#allocation2 + $0x28] sm:$0xff] }
 0x4f9   :  { %v728_v43 = vsel %vm260_vm11, %v722_v35, -inf  ;;  %v725_v44 = vsel %vm260_vm11, %v721_v37, -inf }
 0x4fa   :  { %729 = vmax.xlane.f32.xlu0 %v728_v43  ;;  %726 = vmax.xlane.f32.xlu1 %v725_v44  ;;  %v731_v49 = vsel %vm260_vm11, %v723_v41, -inf  ;;  %v734_v51 = vsel %vm260_vm11, %v724_v42, -inf }
 0x4fb   :  { %1869 = vmatprep.subr.bf16.mxu1 %v1868_v20 }
 0x4fc   :  { %1871 = vmatpush3.bf16.msra.mxu1 %v1868_v20 }
 0x4fe   :  { %732 = vmax.xlane.f32.xlu0 %v731_v49  ;;  %735 = vmax.xlane.f32.xlu1 %v734_v51  ;;  %v1863_v49 = vpack.c.bf16 %v905_v39, %v904_v25 }
 0x50f   :  { %756 = vrot.lane.b32.xlu1 %v2198_v38, %s2026_s8 }
 0x514   :  { %758 = vrot.lane.b32.xlu0 %v34_v0, %s2026_s8 }
 0x587   :  { %v730_v55 = vpop.xlane.xlu0 %729  ;;  %v727_v56 = vpop.xlane.xlu1 %726 }
 0x588   :  { %v738_v57 = vsub.f32 %v722_v35, %v730_v55  ;;  %v737_v58 = vsub.f32 %v721_v37, %v727_v56  ;;  %v554_v37 = vsub.s32 4, %v2155_v50 }
 0x58a   :  { %v743_v59 = vmul.f32 1.442695, %v738_v57  ;;  %v741_v60 = vmul.f32 1.442695, %v737_v58  ;;  %v555_v51 = vrot.slane %v2128_v45, %v554_v37 }
 0x58b   :  { %v733_v61 = vpop.xlane.xlu0 %732  ;;  %v736_v46 = vpop.xlane.xlu1 %735 }
 0x58c   :  { %1945 = vpow2.f32 %v743_v59  ;;  %v739_v62 = vsub.f32 %v723_v41, %v733_v61  ;;  %v740_v48 = vsub.f32 %v724_v42, %v736_v46  ;;  %v983_v46 = vld [vmem:[#allocation2 + $0x50] sm:$0xff] }
 0x58d   :  { %1947 = vpow2.f32 %v741_v60  ;;  %v1897_v60 = vadd.f32 %v555_v51, %v2233_v4  ;;  %v984_v4 = vld [vmem:[#allocation2 + $0x58] sm:$0xff] }
 0x58e   :  { %v745_v1 = vmul.f32 1.442695, %v739_v62  ;;  %v747_v2 = vmul.f32 1.442695, %v740_v48  ;;  %v1872_v62 = vpack.c.bf16 %v984_v4, %v983_v46 }
 0x58f   :  { %v757_v6 = vpop.permute.xlu1 %756  ;;  %v759_v9 = vpop.permute.xlu0 %758  ;;  %v558_v61 = vmax.f32 %v1897_v60, 0.0 }
 0x590   :  { %1949 = vpow2.f32 %v745_v1  ;;  %1873 = vmatprep.subr.bf16.mxu1 %v1872_v62 }
 0x591   :  { %1951 = vpow2.f32 %v747_v2  ;;  %1875 = vmatpush3.bf16.msra.mxu1 %v1872_v62 }
 0x592   :  { %1880 = vmatprep.subr.bf16.mxu1 %v2022_v22 }
 0x596   :  { %v1946_v38 = vpop.eup %1945 }
 0x597   :  { %v1948_v0 = vpop.eup %1947  ;;  %v765_v3 = vmul.f32 %v1946_v38, %v755_v53  ;;  %v906_v53 = vld [vmem:[#allocation2 + $0x30] sm:$0xff] }
 0x598   :  { %v764_v5 = vmul.f32 %v1948_v0, %v753_v54  ;;  %v907_v54 = vld [vmem:[#allocation2 + $0x38] sm:$0xff] }
 0x599   :  { %v771_v7 = vsel %vm260_vm11, %v765_v3, 0.0  ;;  %v1866_v59 = vpack.c.bf16 %v907_v54, %v906_v53 }
 0x59a   :  { %v1950_v10 = vpop.eup %1949  ;;  %772 = vadd.xlane.f32.xlu0 %v771_v7  ;;  %v768_v11 = vsel %vm260_vm11, %v764_v5, 0.0 }
 0x59b   :  { %v1952_v12 = vpop.eup %1951  ;;  %769 = vadd.xlane.f32.xlu1 %v768_v11  ;;  %v766_v13 = vmul.f32 %v1950_v10, %v757_v6 }
 0x59c   :  { %v767_v14 = vmul.f32 %v1952_v12, %v759_v9 }
 0x59d   :  { %v774_v16 = vsel %vm260_vm11, %v766_v13, 0.0 }
 0x59e   :  { %v777_v17 = vsel %vm260_vm11, %v767_v14, 0.0  ;;  %775 = vadd.xlane.f32.xlu0 %v774_v16 }
 0x59f   :  { %778 = vadd.xlane.f32.xlu1 %v777_v17 }
 0x627   :  { %v773_v21 = vpop.xlane.xlu0 %772 }
 0x628   :  { %vm781_vm8 = vcmp.gt.f32.partialorder %v773_v21, 0.0  ;;  %v770_v27 = vpop.xlane.xlu1 %769 }
 0x629   :  { %v785_v29 = vsel %vm781_vm8, %v773_v21, 1.0  ;;  %vm780_vm10 = vcmp.gt.f32.partialorder %v770_v27, 0.0 }
 0x62a   :  { %1953 = vrcp.f32 %v785_v29  ;;  %v784_v30 = vsel %vm780_vm10, %v770_v27, 1.0  ;;  %v1114_v29 = vrot.slane %v2128_v45, 5 }
 0x62b   :  { %1955 = vrcp.f32 %v784_v30  ;;  %v776_v31 = vpop.xlane.xlu0 %775  ;;  %v2286_v30 = vld [vmem:[#allocation2 + $0x88] sm:$0xff] }
 0x62c   :  { %vm782_vm12 = vcmp.gt.f32.partialorder %v776_v31, 0.0  ;;  %v779_v32 = vpop.xlane.xlu1 %778 }
 0x62d   :  { %v786_v33 = vsel %vm782_vm12, %v776_v31, 1.0  ;;  %vm783_vm14 = vcmp.gt.f32.partialorder %v779_v32, 0.0  ;;  %v1101_v31 = vrot.slane %v2286_v30, %v2158_v52 }
 0x62e   :  { %1957 = vrcp.f32 %v786_v33  ;;  %v787_v35 = vsel %vm783_vm14, %v779_v32, 1.0 }
 0x62f   :  { %1959 = vrcp.f32 %v787_v35 }
 0x634   :  { %v1954_v41 = vpop.eup %1953 }
 0x635   :  { %v1956_v42 = vpop.eup %1955  ;;  %v793_v43 = vmul.f32 %v1954_v41, %v765_v3 }
 0x636   :  { %v792_v44 = vmul.f32 %v1956_v42, %v764_v5 }
 0x638   :  { %v1958_v55 = vpop.eup %1957  ;;  %1755 = vmatprep.mubr.msk.f32.mxu0 %vm260_vm11, %v792_v44  ;;  %v1291_v44 = vrot.slane %v2128_v45, 7 }
 0x639   :  { %v1960_v56 = vpop.eup %1959  ;;  %1756 = vmatmul.mubr.msk.f32.vlgmr.msra.gmra.mrb[6].mxu0 %vm260_vm11, %v793_v43  ;;  %v794_v57 = vmul.f32 %v1958_v55, %v766_v13 }
 0x63a   :  { %1864 = vmatpush3.bf16.msra.mxu0 %v1863_v49  ;;  %v795_v58 = vmul.f32 %v1960_v56, %v767_v14 }
 0x63b   :  { %1758 = vmatprep.mubr.msk.f32.mxu0 %vm260_vm11, %v794_v57  ;;  %1865 = vmatprep.subr.bf16.mxu0 %v2022_v22 }
 0x63d   :  { %1759 = vmatmul.mubr.msk.f32.gmra.mrb[8].mxu0 %vm260_vm11, %v795_v58 }
 0x63e   :  { %1867 = vmatpush3.bf16.msra.mxu0 %v1866_v59  ;;  %1769 = vmatprep.mubr.msk.f32.mxu0 %vm2023_vm5, %v2021_v15 }
 0x63f   :  { %1876 = vmatprep.subr.bf16.mxu0 %v2022_v22 }
 0x641   :  { %1770 = vmatmul.mubr.msk.f32.vlgmr.msra.gmra.mrb[10].mxu0 %vm69_vm0, %v558_v61 }
 0x642   :  { %1790 = vmatprep.mubr.msk.f32.mxu0 %vm2023_vm5, %v2021_v15 }
 0x70c   :  { %v1757_v48 = vpop.f32.mrb[6].mxu0 }
 0x70d   :  { %v897_v1 = vadd.f32 %v1757_v48, %v2084_v23  ;;  %v877_v2 = vpop.f32.mrb[7].mxu0 }
 0x70e   :  { %v896_v38 = vadd.f32 %v877_v2, %v2086_v24 }
 0x70f   :  { %v901_v5 = vmax.f32 %v897_v1, 0.0 }
 0x710   :  { %v900_v0 = vmax.f32 %v896_v38, 0.0  ;;  %v1760_v3 = vpop.f32.mrb[8].mxu0 }
 0x711   :  { %v899_v6 = vadd.f32 %v1760_v3, %v2098_v26  ;;  %v887_v7 = vpop.f32.mrb[9].mxu0 }
 0x712   :  { %v898_v9 = vadd.f32 %v887_v7, %v2101_v28  ;;  %1780 = vmatprep.mubr.msk.f32.mxu1 %vm69_vm0, %v900_v0  ;;  %v1084_v28 = vsub.s32 6, %v2155_v50 }
 0x713   :  { %1781 = vmatmul.mubr.msk.f32.vlgmr.msra.gmra.mrb[6].mxu1 %vm69_vm0, %v901_v5  ;;  %v903_v12 = vmax.f32 %v899_v6, 0.0 }
 0x714   :  { %v902_v10 = vmax.f32 %v898_v9, 0.0  ;;  %v2268_v11 = vpop.f32.mrb[10].mxu0  ;;  %v1085_v20 = vrot.slane %v2128_v45, %v1084_v28 }
 0x715   :  { %v1771_v23 = vpop.f32.mrb[11].mxu0 }
 0x716   :  { %1783 = vmatprep.mubr.msk.f32.mxu1 %vm69_vm0, %v902_v10 }
 0x717   :  { %1784 = vmatmul.mubr.msk.f32.gmra.mrb[8].mxu1 %vm69_vm0, %v903_v12 }
 0x718   :  { %1797 = vmatprep.mubr.msk.f32.mxu1 %vm2023_vm5, %v2021_v15 }
 0x7e6   :  { %v1782_v24 = vpop.f32.mrb[6].mxu1 }
 0x7e7   :  { %v1063_v26 = vpop.f32.mrb[7].mxu1  ;;  %v1294_v18 = vrot.slane %v1782_v24, 4 }
 0x7e8   :  { %v1877_v13 = vpack.c.bf16 %v1782_v24, %v1063_v26 }
 0x7ea   :  { %v1785_v14 = vpop.f32.mrb[8].mxu1  ;;  %1879 = vmatpush3.bf16.xpose.msk.msra.mxu0 %vm2121_vm7, %v1877_v13  ;;  %1883 = vmatpush3.bf16.msk.msra.mxu1 %vm2133_vm9, %v1877_v13 }
 0x7eb   :  { %v1297_v16 = vrot.slane %v1785_v14, 4  ;;  %v1073_v17 = vpop.f32.mrb[9].mxu1  ;;  %1884 = vmatprep.subr.bf16.mxu0 %v2022_v22  ;;  %1888 = vmatprep.subr.bf16.mxu1 %v2022_v22 }
 0x7ec   :  { %v1295_v19 = vrot.slane %v1073_v17, 4 }
 0x7ed   :  { %1303 = vrot.lane.b32.xlu1 %v1297_v16, %s2024_s0 }
 0x7ee   :  { %v1296_v21 = vsel %vm279_vm6, %v1294_v18, %v1295_v19  ;;  %v1298_v27 = vsel %vm279_vm6, %v1295_v19, %v1297_v16 }
 0x7ef   :  { %v1932_v47 = vpack.i.bf16 %v1298_v27, %v1296_v21  ;;  %v1492_v27 = vld [vmem:[#allocation2 + $0x70] sm:$0xff] }
 0x7f1   :  { %1087 = vrot.lane.b32.xlu1 %v1085_v20, %s2027_s1  ;;  %1933 = vrot.lane.b32.xlu0 %v1932_v47, %s2024_s0 }
 0x7f2   :  { %1791 = vmatmul.mubr.msk.f32.vlgmr.msra.gmra.mrb[12].mxu0 %vm69_vm0, %v1114_v29  ;;  %v1493_v29 = vld [vmem:[#allocation2 + $0x78] sm:$0xff] }
 0x7f3   :  { %1806 = vmatprep.mubr.msk.f32.mxu0 %vm2023_vm5, %v2021_v15  ;;  %v1895_v47 = vpack.c.bf16 %v1493_v29, %v1492_v27 }
 0x7f5   :  { %1103 = vrot.lane.b32.xlu0 %v1101_v31, %s2026_s8  ;;  %v1485_v31 = vsub.s32 1, %v2155_v50 }
 0x85f   :  { %v2295_v32 = vpop.permute.xlu1 %1303 }
 0x863   :  { %v1088_v33 = vpop.permute.xlu1 %1087  ;;  %v1934_v35 = vpop.permute.xlu0 %1933 }
 0x864   :  { %v1090_v37 = vmul.f32 %v1088_v33, %v2268_v11  ;;  %v1936_v25 = vunpack.i.h.bf16 %v1934_v35  ;;  %v1935_v39 = vunpack.i.l.bf16 %v1934_v35 }
 0x866   :  { %v2298_v41 = vpack.c.bf16 %v1936_v25, %v1935_v39  ;;  %1092 = vrot.lane.b32.xlu1 %v1090_v37, %s2024_s0  ;;  %v1496_v39 = vsub.s32 2, %v2155_v50 }
 0x867   :  { %v1104_v42 = vpop.permute.xlu0 %1103 }
 0x868   :  { %v1106_v43 = vmul.f32 %v1104_v42, %v2268_v11  ;;  %1887 = vmatpush3.bf16.xpose.msk.msra.mxu0 %vm2121_vm7, %v2298_v41 }
 0x869   :  { %1804 = vmatprep.subr.mxu0 %v2021_v15 }
 0x86a   :  { %1108 = vrot.lane.b32.xlu0 %v1106_v43, %s2026_s8 }
 0x870   :  { %1805 = vmatpush3.xpose.msk.msra.mxu0 %vm69_vm0, %v2295_v32 }
 0x873   :  { %1807 = vmatmul.mubr.msk.f32.vlgmr.msra.gmra.mrb[14].mxu0 %vm69_vm0, %v1291_v44 }
 0x8c5   :  { %v1189_v49 = vpop.f32.mrb[12].mxu0 }
 0x8c6   :  { %v1792_v51 = vpop.f32.mrb[13].mxu0  ;;  %v1196_v58 = vrot.slane %v1189_v49, %v2158_v52 }
 0x8d8   :  { %v1093_v53 = vpop.permute.xlu1 %1092 }
 0x8d9   :  { %v1095_v54 = vsel %vm69_vm0, %v1093_v53, 0.0 }
 0x8da   :  { %1096 = vadd.xlane.f32.xlu1 %v1095_v54 }
 0x8dc   :  { %v1109_v55 = vpop.permute.xlu0 %1108 }
 0x8dd   :  { %v1111_v40 = vsel %vm69_vm0, %v1109_v55, 0.0 }
 0x8de   :  { %1112 = vadd.xlane.f32.xlu0 %v1111_v40 }
 0x946   :  { %v1379_v56 = vpop.f32.mrb[14].mxu0 }
 0x947   :  { %v1808_v57 = vpop.f32.mrb[15].mxu0  ;;  %v1386_v60 = vrot.slane %v1379_v56, %v2158_v52 }
 0x967   :  { %v1097_v45 = vpop.xlane.xlu1 %1096 }
 0x968   :  { %v1197_v59 = vadd.f32 %v1196_v58, %v1097_v45 }
 0x96a   :  { %vm1198_vm7 = vcmp.gt.f32.partialorder %v1197_v59, 0.0  ;;  %v1199_v61 = vmul.f32 0.2, %v1197_v59 }
 0x96b   :  { %v1113_v46 = vpop.xlane.xlu0 %1112 }
 0x96c   :  { %v1387_v4 = vadd.f32 %v1386_v60, %v1113_v46  ;;  %v1200_v62 = vsel %vm1198_vm7, %v1197_v59, %v1199_v61 }
 0x96d   :  { %v1201_v48 = vadd.f32 %v1200_v62, %v2115_v36 }
 0x96e   :  { %vm1388_vm9 = vcmp.gt.f32.partialorder %v1387_v4, 0.0  ;;  %v1389_v1 = vmul.f32 0.2, %v1387_v4 }
 0x96f   :  { %v1202_v2 = vsel %vm260_vm11, %v1201_v48, -inf }
 0x970   :  { %1203 = vmax.xlane.f32.xlu0 %v1202_v2  ;;  %v1390_v38 = vsel %vm1388_vm9, %v1387_v4, %v1389_v1 }
 0x971   :  { %v1391_v0 = vadd.f32 %v1390_v38, %v2163_v63 }
 0x973   :  { %v1392_v3 = vsel %vm456_vm13, %v1391_v0, -inf }
 0x974   :  { %1393 = vmax.xlane.f32.xlu1 %v1392_v3 }
 0x9fd   :  { %v1204_v5 = vpop.xlane.xlu0 %1203 }
 0x9fe   :  { %v1205_v52 = vsub.f32 %v1201_v48, %v1204_v5 }
 0xa00   :  { %v1206_v6 = vmul.f32 1.442695, %v1205_v52 }
 0xa01   :  { %v1394_v7 = vpop.xlane.xlu1 %1393 }
 0xa02   :  { %1961 = vpow2.f32 %v1206_v6  ;;  %v1395_v9 = vsub.f32 %v1391_v0, %v1394_v7 }
 0xa04   :  { %v1396_v10 = vmul.f32 1.442695, %v1395_v9 }
 0xa06   :  { %1963 = vpow2.f32 %v1396_v10 }
 0xa0c   :  { %v1962_v36 = vpop.eup %1961 }
 0xa0d   :  { %v1208_v12 = vmul.f32 %v1962_v36, %v2112_v34  ;;  %v1490_v34 = vld [vmem:[#allocation2 + $0x60] sm:$0xff] }
 0xa0f   :  { %v1209_v23 = vsel %vm260_vm11, %v1208_v12, 0.0 }
 0xa10   :  { %v1964_v24 = vpop.eup %1963  ;;  %1210 = vadd.xlane.f32.xlu0 %v1209_v23 }
 0xa11   :  { %v1398_v63 = vmul.f32 %v1964_v24, %v2173_v8  ;;  %v1491_v8 = vld [vmem:[#allocation2 + $0x68] sm:$0xff] }
 0xa12   :  { %v1892_v20 = vpack.c.bf16 %v1491_v8, %v1490_v34 }
 0xa13   :  { %v1399_v26 = vsel %vm456_vm13, %v1398_v63, 0.0 }
 0xa14   :  { %1400 = vadd.xlane.f32.xlu1 %v1399_v26 }
 0xa9d   :  { %v1211_v13 = vpop.xlane.xlu0 %1210 }
 0xa9e   :  { %vm1212_vm15 = vcmp.gt.f32.partialorder %v1211_v13, 0.0 }
 0xa9f   :  { %v1213_v28 = vsel %vm1212_vm15, %v1211_v13, 1.0 }
 0xaa0   :  { %1965 = vrcp.f32 %v1213_v28 }
 0xaa1   :  { %v1401_v14 = vpop.xlane.xlu1 %1400 }
 0xaa2   :  { %vm1402_vm1 = vcmp.gt.f32.partialorder %v1401_v14, 0.0 }
 0xaa3   :  { %v1403_v16 = vsel %vm1402_vm1, %v1401_v14, 1.0 }
 0xaa4   :  { %1967 = vrcp.f32 %v1403_v16 }
 0xaaa   :  { %v1966_v17 = vpop.eup %1965 }
 0xaab   :  { %v1215_v18 = vmul.f32 %v1966_v17, %v1208_v12 }
 0xaad   :  { %1798 = vmatmul.mubr.msk.f32.vlgmr.msra.gmra.mrb[10].mxu1 %vm260_vm11, %v1215_v18 }
 0xaae   :  { %1890 = vmatpush3.bf16.msra.mxu1 %v2298_v41  ;;  %1815 = vmatprep.mubr.msk.f32.mxu1 %vm2023_vm5, %v2021_v15  ;;  %v1968_v19 = vpop.eup %1967 }
 0xaaf   :  { %1813 = vmatprep.subr.mxu1 %v2021_v15  ;;  %v1405_v21 = vmul.f32 %v1968_v19, %v1398_v63 }
 0xab2   :  { %1814 = vmatpush3.msk.msra.mxu1 %vm279_vm6, %v2295_v32  ;;  %v1486_v32 = vrot.slane %v2286_v30, %v1485_v31 }
 0xab3   :  { %1891 = vmatprep.subr.bf16.mxu1 %v2022_v22 }
 0xab4   :  { %v1487_v33 = vadd.f32 %v1486_v32, %v2268_v11 }
 0xab5   :  { %1816 = vmatmul.mubr.msk.f32.vlgmr.msra.gmra.mrb[10].mxu1 %vm456_vm13, %v1405_v21 }
 0xab6   :  { %1893 = vmatpush3.bf16.msra.mxu1 %v1892_v20  ;;  %1826 = vmatprep.mubr.msk.f32.mxu1 %vm2023_vm5, %v2021_v15  ;;  %v1497_v15 = vrot.slane %v2286_v30, %v1496_v39 }
 0xab7   :  { %1894 = vmatprep.subr.bf16.mxu1 %v2022_v22 }
 0xaba   :  { %1896 = vmatpush3.bf16.msra.mxu1 %v1895_v47 }
 0xb88   :  { %v1479_v35 = vpop.f32.mrb[10].mxu1 }
 0xb89   :  { %v1898_v37 = vadd.f32 %v1487_v33, %v1479_v35  ;;  %v1817_v25 = vpop.f32.mrb[11].mxu1 }
 0xb8b   :  { %1827 = vmatmul.mubr.msk.f32.vlgmr.msra.gmra.mrb[12].mxu1 %vm69_vm0, %v1898_v37 }
 0xc5e   :  { %v1567_v22 = vpop.f32.mrb[12].mxu1 }
 0xc5f   :  { %v1568_v41 = vadd.f32 %v1567_v22, %v1497_v15  ;;  %v1828_v42 = vpop.f32.mrb[13].mxu1 }
 0xc61   :  { %1571 = vst [vmem:[#allocation5] sm:$0xff] %v1568_v41 }
 0xc62   :  { %2002 = shalt.err (!%p1999_p12)
}
 0xc63   :  { %s2003_s20 = scalar_lea.hbm %s2356_s3, 128 }
 0xc64   :  { %p2004_p13 = scmp.ne.s32.totalorder %s2356_s3, %s2003_s20  ;;  %p2007_p0 = scmp.lt.u32.totalorder %s2003_s20, %s2356_s3 }
 0xc66   :  { %p2009_p1 = pnand %p2007_p0, %p2004_p13 }
 0xc68   :  { %2012 = shalt.err (!%p2009_p1)
}
 0xc69   :  { %1581 = dma.vmem_to_hbm [thread:$0]  %s1579_s16, 128, %s2356_s3, [#allocation4]  }
 0xc6a   :  { %2015 = dma.done.wait [#allocation4], 128  }
 0xc6b   :  { %2016 = vsyncadd [#allocation4], 4294967168 }
 0xc6c   :  { %1585 = vsyncpa [#allocation3], 1 }
 0xc6d   :  { %1586 = vsyncpa [#allocation4], 1 }

</bundles_post_ra>
